<compile_context>
chip_gen: v7x
topology: tpu7x:2x2x1
jax: 0.10.0
libtpu: 0.0.40
codegen_flags: <defaults>
</compile_context>

<pallas_src>
import jax
import jax.numpy as jnp
from jax.experimental import pallas as pl
from jax.experimental.pallas import tpu as pltpu

_IN = 7          # real input features
_IN_PAD = 8      # padded to a full sublane group
_H = 32          # hidden width
# slab columns: [0:8)=W1 (padded), [8:40)=W2, 40=b1, 41=b2, 42=w3, 43=b3
_SLAB_COLS = _IN_PAD + _H + 4


def _gelu_exact(x):
    # torch.nn.GELU() default is the exact (erf-based) formulation. Kept in f32
    # (v5e has no bf16 VPU/EUP).
    return 0.5 * x * (1.0 + jax.lax.erf(x * 0.7071067811865476))


def mlp_kernel(x_ref, p_ref, o_ref):
    # x_ref: [8, TM]  features on sublanes, batch on lanes
    # p_ref: [32, 44] packed parameters, resident across all grid steps
    # o_ref: [1, TM]  lane-dense output row
    x = x_ref[...]

    w1 = p_ref[:, 0:_IN_PAD]                # [32, 8]  (col 7 is zero padding)
    w2 = p_ref[:, _IN_PAD:_IN_PAD + _H]     # [32, 32]
    b1 = p_ref[:, 40:41]                    # [32, 1]
    b2 = p_ref[:, 41:42]                    # [32, 1]
    w3 = p_ref[:, 42:43]                    # [32, 1]
    b3 = p_ref[0:1, 43:44]                  # [1, 1]

    h1 = jnp.dot(w1, x, preferred_element_type=jnp.float32) + b1   # [32, TM]
    h1 = _gelu_exact(h1)

    h2 = jnp.dot(w2, h1, preferred_element_type=jnp.float32) + b2  # [32, TM]
    h2 = _gelu_exact(h2)

    # Final [32] -> [1] layer: VPU broadcast-mul + XLU sublane reduce; avoids a
    # wasteful single-column MXU push/pop and feeds a dense store.
    h3 = jnp.sum(h2 * w3, axis=0, keepdims=True) + b3               # [1, TM]

    o_ref[...] = h3.astype(o_ref.dtype)


def pack_params(params):
    """Pack (w1,b1,w2,b2,w3,b3) [torch layout] into one [32, 44] f32 slab."""
    w1, b1, w2, b2, w3, b3 = params
    slab = jnp.zeros((_H, _SLAB_COLS), jnp.float32)
    slab = slab.at[:, 0:_IN].set(w1.astype(jnp.float32))            # [32, 7]
    slab = slab.at[:, _IN_PAD:_IN_PAD + _H].set(w2.astype(jnp.float32))
    slab = slab.at[:, 40].set(b1.astype(jnp.float32))
    slab = slab.at[:, 41].set(b2.astype(jnp.float32))
    slab = slab.at[:, 42].set(w3[0].astype(jnp.float32))            # row -> col
    slab = slab.at[:, 43].set(b3[0].astype(jnp.float32))            # broadcast
    return slab


def simple_model_forward(x, params, tm=1024):
    """x: [batch, 7] -> [batch, 1], matching SimpleModel.forward."""
    batch = x.shape[0]

    # Batch tile on the lane axis: multiple of 128, up to `tm` (1024 amortizes
    # the ~0.35us/step overhead and stays tiny vs. v7x's 64 MiB VMEM).
    tm = max(128, min(tm, pl.cdiv(batch, 128) * 128))
    batch_p = pl.cdiv(batch, tm) * tm

    # [batch, 7] -> [8, batch_p] (zero-padded feature row + batch padding).
    x_t = jnp.zeros((_IN_PAD, batch_p), jnp.float32)
    x_t = x_t.at[:_IN, :batch].set(x.astype(jnp.float32).T)

    slab = pack_params(params)

    out = pl.pallas_call(
        mlp_kernel,
        out_shape=jax.ShapeDtypeStruct((1, batch_p), jnp.float32),
        grid_spec=pltpu.PrefetchScalarGridSpec(
            num_scalar_prefetch=0,
            grid=(batch_p // tm,),
            in_specs=[
                pl.BlockSpec((_IN_PAD, tm), lambda i: (0, i)),       # x tiles
                pl.BlockSpec((_H, _SLAB_COLS), lambda i: (0, 0)),    # resident params
            ],
            out_specs=pl.BlockSpec((1, tm), lambda i: (0, i)),        # lane-dense
        ),
        compiler_params=pltpu.CompilerParams(
            dimension_semantics=("parallel",)),  # shard batch across v7x's 2 TCs
    )(x_t, slab)

    return out[0, :batch].reshape(batch, 1).astype(x.dtype)


def init_params(key):
    # Deterministic init mimicking PyTorch's default Linear init (torch layout:
    # W is [out, in], b is [out]).
    def linear(key, fan_in, fan_out):
        kw, kb = jax.random.split(key)
        bound = 1.0 / jnp.sqrt(fan_in)
        w = jax.random.uniform(kw, (fan_out, fan_in), jnp.float32, -bound, bound)
        b = jax.random.uniform(kb, (fan_out,), jnp.float32, -bound, bound)
        return w, b

    k1, k2, k3 = jax.random.split(key, 3)
    w1, b1 = linear(k1, 7, 32)
    w2, b2 = linear(k2, 32, 32)
    w3, b3 = linear(k3, 32, 1)
    return (w1, b1, w2, b2, w3, b3)


if __name__ == "__main__":
    key = jax.random.PRNGKey(0)
    k_params, k_x = jax.random.split(key)

    params = init_params(k_params)
    x = jax.random.normal(k_x, (8, 7), jnp.float32)   # batch=8, in_features=7

    out = simple_model_forward(x, params)
    out = jax.block_until_ready(out)

    # Pure-JAX reference (exact erf GELU, matching torch.nn.GELU() default).
    w1, b1, w2, b2, w3, b3 = params

    def gelu(v):
        return 0.5 * v * (1.0 + jax.lax.erf(v / jnp.sqrt(2.0)))

    h = gelu(x @ w1.T + b1)
    h = gelu(h @ w2.T + b2)
    ref = h @ w3.T + b3

    assert out.shape == (8, 1)
    assert jnp.allclose(out, ref, atol=1e-5, rtol=1e-5)

    print("KERNEL_OK")
</pallas_src>

<mosaic_0001>
module attributes {stable_mosaic.version = 11 : i64} {
  func.func @mlp_kernel(%arg0: i32, %arg1: memref<8x128xf32, #tpu.memory_space<vmem>>, %arg2: memref<32x44xf32, #tpu.memory_space<vmem>>, %arg3: memref<1x128xf32, #tpu.memory_space<vmem>>) attributes {dimension_semantics = [#tpu.dimension_semantics<parallel>], iteration_bounds = array<i64: 1>, scalar_prefetch = 0 : i64, scratch_operands = 0 : i64, tpu.core_type = #tpu.core_type<tc>, window_params = [{transform_indices = @transform_0, window_bounds = array<i64: 8, 128>}, {pipeline_mode = #tpu.pipeline_mode<synchronous>, transform_indices = @transform_1, window_bounds = array<i64: 32, 44>}, {transform_indices = @transform_2, window_bounds = array<i64: 1, 128>}]} {
    %c0 = arith.constant 0 : index
    %c0_0 = arith.constant 0 : index
    %0 = vector.load %arg1[%c0, %c0_0] : memref<8x128xf32, #tpu.memory_space<vmem>>, vector<8x128xf32>
    %c0_1 = arith.constant 0 : index
    %c0_2 = arith.constant 0 : index
    %1 = vector.load %arg2[%c0_1, %c0_2] : memref<32x44xf32, #tpu.memory_space<vmem>>, vector<32x8xf32>
    %c0_3 = arith.constant 0 : index
    %c8 = arith.constant 8 : index
    %2 = vector.load %arg2[%c0_3, %c8] : memref<32x44xf32, #tpu.memory_space<vmem>>, vector<32x32xf32>
    %c0_4 = arith.constant 0 : index
    %c40 = arith.constant 40 : index
    %3 = vector.load %arg2[%c0_4, %c40] : memref<32x44xf32, #tpu.memory_space<vmem>>, vector<32x1xf32>
    %c0_5 = arith.constant 0 : index
    %c41 = arith.constant 41 : index
    %4 = vector.load %arg2[%c0_5, %c41] : memref<32x44xf32, #tpu.memory_space<vmem>>, vector<32x1xf32>
    %c0_6 = arith.constant 0 : index
    %c42 = arith.constant 42 : index
    %5 = vector.load %arg2[%c0_6, %c42] : memref<32x44xf32, #tpu.memory_space<vmem>>, vector<32x1xf32>
    %c0_7 = arith.constant 0 : index
    %c43 = arith.constant 43 : index
    %6 = vector.load %arg2[%c0_7, %c43] : memref<32x44xf32, #tpu.memory_space<vmem>>, vector<1x1xf32>
    %cst = arith.constant dense<0.000000e+00> : vector<32x128xf32>
    %7 = tpu.matmul %1, %0, %cst {dimension_numbers = #tpu.dot_dimension_numbers<[1], [0], [0], [1], [0, 0, 1, 1], [], []>} : vector<32x8xf32>, vector<8x128xf32>, vector<32x128xf32> -> vector<32x128xf32>
    %8 = vector.broadcast %3 : vector<32x1xf32> to vector<32x128xf32>
    %9 = arith.addf %7, %8 : vector<32x128xf32>
    %cst_8 = arith.constant 5.000000e-01 : f32
    %10 = vector.broadcast %cst_8 : f32 to vector<32x128xf32>
    %11 = arith.mulf %10, %9 : vector<32x128xf32>
    %cst_9 = arith.constant 0.707106769 : f32
    %12 = vector.broadcast %cst_9 : f32 to vector<32x128xf32>
    %13 = arith.mulf %9, %12 : vector<32x128xf32>
    %14 = math.erf %13 : vector<32x128xf32>
    %cst_10 = arith.constant 1.000000e+00 : f32
    %15 = vector.broadcast %cst_10 : f32 to vector<32x128xf32>
    %16 = arith.addf %15, %14 : vector<32x128xf32>
    %17 = arith.mulf %11, %16 : vector<32x128xf32>
    %cst_11 = arith.constant dense<0.000000e+00> : vector<32x128xf32>
    %18 = tpu.matmul %2, %17, %cst_11 {dimension_numbers = #tpu.dot_dimension_numbers<[1], [0], [0], [1], [0, 0, 1, 1], [], []>} : vector<32x32xf32>, vector<32x128xf32>, vector<32x128xf32> -> vector<32x128xf32>
    %19 = vector.broadcast %4 : vector<32x1xf32> to vector<32x128xf32>
    %20 = arith.addf %18, %19 : vector<32x128xf32>
    %cst_12 = arith.constant 5.000000e-01 : f32
    %21 = vector.broadcast %cst_12 : f32 to vector<32x128xf32>
    %22 = arith.mulf %21, %20 : vector<32x128xf32>
    %cst_13 = arith.constant 0.707106769 : f32
    %23 = vector.broadcast %cst_13 : f32 to vector<32x128xf32>
    %24 = arith.mulf %20, %23 : vector<32x128xf32>
    %25 = math.erf %24 : vector<32x128xf32>
    %cst_14 = arith.constant 1.000000e+00 : f32
    %26 = vector.broadcast %cst_14 : f32 to vector<32x128xf32>
    %27 = arith.addf %26, %25 : vector<32x128xf32>
    %28 = arith.mulf %22, %27 : vector<32x128xf32>
    %29 = vector.broadcast %5 : vector<32x1xf32> to vector<32x128xf32>
    %30 = arith.mulf %28, %29 : vector<32x128xf32>
    %cst_15 = arith.constant dense<0.000000e+00> : vector<128xf32>
    %31 = vector.multi_reduction <add>, %30, %cst_15 [0] : vector<32x128xf32> to vector<128xf32>
    %32 = vector.shape_cast %31 : vector<128xf32> to vector<1x128xf32>
    %33 = vector.broadcast %6 : vector<1x1xf32> to vector<1x128xf32>
    %34 = arith.addf %32, %33 : vector<1x128xf32>
    %c0_16 = arith.constant 0 : index
    %c0_17 = arith.constant 0 : index
    %35 = vector.load %arg3[%c0_16, %c0_17] : memref<1x128xf32, #tpu.memory_space<vmem>>, vector<1x128xf32>
    tpu.vector_store %arg3[%c0_16, %c0_17], %34 {strides = array<i32>} : memref<1x128xf32, #tpu.memory_space<vmem>>, vector<1x128xf32>,
    return
  }
  func.func @transform_0(%arg0: i32) -> (i32, i32) {
    %c0_i32 = arith.constant 0 : i32
    %c0_i32_0 = arith.constant 0 : i32
    return %c0_i32, %arg0 : i32, i32
  }
  func.func @transform_1(%arg0: i32) -> (i32, i32) {
    %c0_i32 = arith.constant 0 : i32
    %c0_i32_0 = arith.constant 0 : i32
    %c0_i32_1 = arith.constant 0 : i32
    return %c0_i32, %c0_i32_0 : i32, i32
  }
  func.func @transform_2(%arg0: i32) -> (i32, i32) {
    %c0_i32 = arith.constant 0 : i32
    %c0_i32_0 = arith.constant 0 : i32
    return %c0_i32, %arg0 : i32, i32
  }
}

</mosaic_0001>

<bundles_post_ra>
// kernel: tpu_custom_call.1
= control target key start
LH: loop header
LB: loop body
LE: loop exit
PB: predicated region body
PF: predicated region fallthrough
CT: control target
= control target key end

     0   :  { %7 = vsyncpa [#allocation3], 0  ;;  %s600_s0 = inlined_call_operand.hbm [shape: f32[8,128], index: 0, kind: input, shape index: {}]   ;;  %s601_s1 = inlined_call_operand.hbm [shape: f32[32,44], index: 1, kind: input, shape index: {}]   ;;  %s602_s2 = inlined_call_operand.hbm [shape: f32[1,128], index: 2, kind: output, shape index: {}]  }
   0x1   :  { %8 = vsyncpa [#allocation6], 0 }
   0x2   :  { %9 = vsyncpa [#allocation4], 0  ;;  %s528_s9 = smov [#allocation2]   ;;  %s529_s11 = smov [#allocation5]  }
   0x3   :  { %s16_s10 = sshll.u32 %s528_s9, 4  ;;  %s25_s12 = sshll.u32 %s529_s11, 4  ;;  %s17_s10 = int_to_ptr.vmem [resolvable:$true] %s16_s10  ;;  %s553_s12 = int_to_ptr.vmem [resolvable:$true] %s25_s12 }
   0x4   :  { %s456_s15 = scalar_lea.hbm %s600_s0, 128 }
   0x5   :  { %p457_p0 = scmp.ne.s32.totalorder %s600_s0, %s456_s15  ;;  %p460_p1 = scmp.lt.u32.totalorder %s456_s15, %s600_s0 }
   0x7   :  { %p462_p2 = pnand %p460_p1, %p457_p0 }
   0x9   :  { %465 = shalt.err (!%p462_p2)
}
   0xa   :  { %s466_s20 = scalar_lea.vmem %s17_s10, 128  ;;  %p471_p4 = scmp.lt.s32.totalorder %s17_s10, %s17_s10 }
   0xb   :  { %p467_p3 = scmp.ne.s32.totalorder %s17_s10, %s466_s20  ;;  %p472_p5 = scmp.lt.s32.totalorder %s466_s20, %s466_s20 }
   0xd   :  { %p473_p6 = por %p472_p5, %p471_p4 }
   0xf   :  { %p474_p7 = pnand %p473_p6, %p467_p3 }
  0x11   :  { %477 = shalt.err (!%p474_p7)
}
  0x12   :  { %19 = dma.hbm_to_vmem [thread:$0]  %s600_s0, 128, %s17_s10, [#allocation3]  }
  0x13   :  { %s478_s25 = scalar_lea.hbm %s601_s1, 512 }
  0x14   :  { %p479_p8 = scmp.ne.s32.totalorder %s601_s1, %s478_s25  ;;  %p482_p9 = scmp.lt.u32.totalorder %s478_s25, %s601_s1 }
  0x16   :  { %p484_p10 = pnand %p482_p9, %p479_p8 }
  0x18   :  { %487 = shalt.err (!%p484_p10)
}
  0x19   :  { %s488_s30 = scalar_lea.vmem %s553_s12, 512  ;;  %p493_p12 = scmp.lt.s32.totalorder %s553_s12, %s553_s12 }
  0x1a   :  { %p489_p11 = scmp.ne.s32.totalorder %s553_s12, %s488_s30  ;;  %p494_p13 = scmp.lt.s32.totalorder %s488_s30, %s488_s30 }
  0x1c   :  { %p495_p0 = por %p494_p13, %p493_p12 }
  0x1e   :  { %p496_p1 = pnand %p495_p0, %p489_p11 }
  0x20   :  { %499 = shalt.err (!%p496_p1)
}
  0x21   :  { %s530_s0 = smov 128   ;;  %s531_s3 = smov 8  }
  0x22   :  { %31 = dma.hbm_to_vmem [thread:$0]  %s601_s1, 512, %s553_s12, [#allocation6], %s530_s0, %s530_s0, %s531_s3  }
  0x23   :  { %522 = dma.done.wait [#allocation3], 128  }
  0x24   :  { %523 = vsyncadd [#allocation3], 4294967168 }
  0x25   :  { %524 = dma.done.wait [#allocation6], 512  }
  0x26   :  { %525 = vsyncadd [#allocation6], 4294966784  ;;  %v532_v0 = vmov 40   ;;  %vm64_vm0 = vcmask 64512   ;;  %v38_v1 = vld [vmem:[#allocation2] sm:$0xff]  ;;  %v39_v2 = vld [vmem:[#allocation5] sm:$0xff] }
  0x27   :  { %433 = vset.pattern.permute.xlu0 %v532_v0  ;;  %434 = vset.pattern.permute.xlu1 %v532_v0  ;;  %v40_v3 = vld [vmem:[#allocation5 + $0x8] sm:$0xff]  ;;  %v41_v4 = vld [vmem:[#allocation5 + $0x10] sm:$0xff]  ;;  %v42_v5 = vld [vmem:[#allocation5 + $0x18] sm:$0xff]  ;;  %s533_s1 = smov 120   ;;  %v534_v6 = vmov 41   ;;  %v535_v7 = vmov 42  }
  0x28   :  { %389 = vmatprep.subr.mxu0 %v38_v1  ;;  %391 = vmatprep.mubr.msk.f32.mxu0 %vm64_vm0, %v39_v2  ;;  %v43_v9 = vld [vmem:[#allocation5] sm:$0x1]  ;;  %v536_v10 = vmov 43   ;;  %vm202_vm1 = vcmask 261120   ;;  %s537_s6 = smov [#allocation7]  }
  0x29   :  { %390 = vmatpush3.msra.mxu0 %v38_v1  ;;  %46 = vperm.xlu0 %433, %v39_v2   ;;  %s358_s7 = sshll.u32 %s537_s6, 4  ;;  %s359_s7 = int_to_ptr.vmem [resolvable:$true] %s358_s7 }
  0x2a   :  { %392 = vmatmul.mubr.msk.f32.vlgmr.msra.gmra.mrb[0].mxu0 %vm64_vm0, %v40_v3  ;;  %56 = vperm.xlu1 %434, %v41_v4   ;;  %s500_s8 = scalar_lea.vmem %s359_s7, 16  ;;  %s504_s9 = scalar_lea.vmem %s359_s7, 32 }
  0x2b   :  { %394 = vmatprep.mubr.msk.f32.mxu0 %vm64_vm0, %v41_v4  ;;  %p501_p2 = scmp.ne.s32.totalorder %s359_s7, %s500_s8  ;;  %p505_p3 = scmp.lt.s32.totalorder %s359_s7, %s359_s7 }
  0x2c   :  { %p506_p4 = scmp.lt.s32.totalorder %s504_s9, %s500_s8 }
  0x2d   :  { %51 = vperm.xlu0 %433, %v40_v3  }
  0x2e   :  { %395 = vmatmul.mubr.msk.f32.gmra.mrb[2].mxu0 %vm64_vm0, %v42_v5  ;;  %61 = vperm.xlu1 %434, %v42_v5   ;;  %p507_p5 = por %p506_p4, %p505_p3 }
  0x30   :  { %p508_p6 = pnand %p507_p5, %p501_p2 }
  0x31   :  { %194 = vrot.lane.b32.xlu0 %v39_v2, %s533_s1 }
  0x32   :  { %196 = vrot.lane.b32.xlu1 %v40_v3, %s533_s1  ;;  %435 = vset.pattern.permute.xlu0 %v534_v6 }
  0x33   :  { %436 = vset.pattern.permute.xlu1 %v534_v6 }
  0x35   :  { %198 = vrot.lane.b32.xlu0 %v41_v4, %s533_s1 }
  0x36   :  { %200 = vrot.lane.b32.xlu1 %v42_v5, %s533_s1 }
  0x39   :  { %179 = vperm.xlu0 %435, %v39_v2  }
  0x3a   :  { %183 = vperm.xlu1 %436, %v40_v3  }
  0x3d   :  { %191 = vperm.xlu0 %435, %v42_v5  }
  0x3e   :  { %187 = vperm.xlu1 %436, %v41_v4  }
  0x41   :  { %438 = vset.pattern.permute.xlu0 %v535_v7 }
  0x42   :  { %437 = vset.pattern.permute.xlu1 %v535_v7  ;;  %321 = vperm.xlu0 %438, %v40_v3  }
  0x43   :  { %317 = vperm.xlu1 %437, %v39_v2  }
  0x46   :  { %439 = vset.pattern.permute.xlu0 %v536_v10 }
  0x47   :  { %325 = vperm.xlu1 %437, %v41_v4   ;;  %347 = vperm.xlu0 %439, %v43_v9  }
  0x4b   :  { %329 = vperm.xlu1 %437, %v42_v5  }
  0xa8   :  { %v47_v8 = vpop.permute.xlu0 %46 }
  0xa9   :  { %v57_v14 = vpop.permute.xlu1 %56 }
  0xac   :  { %v52_v11 = vpop.permute.xlu0 %51 }
  0xad   :  { %v62_v20 = vpop.permute.xlu1 %61 }
  0xb0   :  { %v195_v12 = vpop.permute.xlu0 %194 }
  0xb1   :  { %405 = vmatprep.mubr.msk.f32.mxu0 %vm202_vm1, %v195_v12  ;;  %v197_v44 = vpop.permute.xlu1 %196 }
  0xb4   :  { %v199_v13 = vpop.permute.xlu0 %198 }
  0xb5   :  { %408 = vmatprep.mubr.msk.f32.mxu1 %vm202_vm1, %v199_v13  ;;  %v201_v47 = vpop.permute.xlu1 %200 }
  0xb8   :  { %v180_v48 = vpop.permute.xlu0 %179 }
  0xb9   :  { %v184_v49 = vpop.permute.xlu1 %183 }
  0xbc   :  { %v192_v50 = vpop.permute.xlu0 %191 }
  0xbd   :  { %v188_v51 = vpop.permute.xlu1 %187 }
  0xc1   :  { %v322_v6 = vpop.permute.xlu0 %321 }
  0xc2   :  { %v318_v0 = vpop.permute.xlu1 %317 }
  0xc6   :  { %v326_v13 = vpop.permute.xlu1 %325 }
  0xfd   :  { %v393_v15 = vpop.f32.mrb[0].mxu0 }
  0xfe   :  { %v145_v16 = vadd.f32 %v393_v15, %v52_v11  ;;  %v139_v17 = vpop.f32.mrb[1].mxu0 }
  0xff   :  { %v140_v18 = vadd.f32 %v139_v17, %v47_v8 }
 0x100   :  { %v163_v19 = vmul.f32 0.70710677, %v145_v16  ;;  %v159_v30 = vmul.f32 0.5, %v145_v16 }
 0x101   :  { %v162_v21 = vmul.f32 0.70710677, %v140_v18  ;;  %v396_v22 = vpop.f32.mrb[2].mxu0  ;;  %v158_v32 = vmul.f32 0.5, %v140_v18 }
 0x102   :  { %440 = verf.f32 %v163_v19  ;;  %v155_v23 = vadd.f32 %v396_v22, %v62_v20  ;;  %v149_v24 = vpop.f32.mrb[3].mxu0 }
 0x103   :  { %442 = verf.f32 %v162_v21  ;;  %v150_v25 = vadd.f32 %v149_v24, %v57_v14 }
 0x104   :  { %v165_v26 = vmul.f32 0.70710677, %v155_v23  ;;  %v161_v38 = vmul.f32 0.5, %v155_v23  ;;  %v330_v23 = vpop.permute.xlu1 %329 }
 0x105   :  { %v164_v27 = vmul.f32 0.70710677, %v150_v25  ;;  %v160_v41 = vmul.f32 0.5, %v150_v25 }
 0x106   :  { %444 = verf.f32 %v165_v26 }
 0x107   :  { %446 = verf.f32 %v164_v27 }
 0x10c   :  { %v441_v28 = vpop.eup %440 }
 0x10d   :  { %v443_v29 = vpop.eup %442  ;;  %v171_v31 = vadd.f32 1.0, %v441_v28 }
 0x10e   :  { %v170_v33 = vadd.f32 1.0, %v443_v29 }
 0x10f   :  { %v175_v34 = vmul.f32 %v171_v31, %v159_v30 }
 0x110   :  { %v445_v35 = vpop.eup %444  ;;  %v174_v36 = vmul.f32 %v170_v33, %v158_v32  ;;  %v348_v32 = vpop.permute.xlu0 %347 }
 0x111   :  { %v447_v37 = vpop.eup %446  ;;  %v173_v39 = vadd.f32 1.0, %v445_v35 }
 0x112   :  { %v411_v40 = vpack.c.bf16 %v175_v34, %v174_v36  ;;  %v172_v42 = vadd.f32 1.0, %v447_v37 }
 0x113   :  { %v177_v43 = vmul.f32 %v173_v39, %v161_v38 }
 0x114   :  { %v176_v45 = vmul.f32 %v172_v42, %v160_v41  ;;  %412 = vmatprep.subr.bf16.mxu0 %v411_v40  ;;  %419 = vmatprep.subr.bf16.mxu1 %v411_v40 }
 0x115   :  { %414 = vmatpush3.bf16.msra.mxu0 %v411_v40  ;;  %421 = vmatpush3.bf16.msra.mxu1 %v411_v40 }
 0x116   :  { %v415_v46 = vpack.c.bf16 %v177_v43, %v176_v45 }
 0x118   :  { %416 = vmatprep.subr.bf16.mxu0 %v415_v46  ;;  %420 = vmatprep.subr.bf16.mxu1 %v415_v46 }
 0x119   :  { %418 = vmatpush3.bf16.msra.mxu0 %v415_v46  ;;  %422 = vmatpush3.bf16.msra.mxu1 %v415_v46 }
 0x11c   :  { %406 = vmatmul.mubr.msk.f32.vlgmr.msra.gmra.mrb[4].mxu0 %vm202_vm1, %v197_v44  ;;  %409 = vmatmul.mubr.msk.f32.vlgmr.msra.gmra.mrb[0].mxu1 %vm202_vm1, %v201_v47 }
 0x1ef   :  { %v407_v52 = vpop.f32.mrb[4].mxu0  ;;  %v410_v53 = vpop.f32.mrb[0].mxu1 }
 0x1f0   :  { %v283_v54 = vadd.f32 %v407_v52, %v184_v49  ;;  %v293_v55 = vadd.f32 %v410_v53, %v192_v50  ;;  %v277_v56 = vpop.f32.mrb[5].mxu0  ;;  %v287_v57 = vpop.f32.mrb[1].mxu1 }
 0x1f1   :  { %v278_v58 = vadd.f32 %v277_v56, %v180_v48  ;;  %v288_v59 = vadd.f32 %v287_v57, %v188_v51 }
 0x1f2   :  { %v301_v60 = vmul.f32 0.70710677, %v283_v54  ;;  %v303_v61 = vmul.f32 0.70710677, %v293_v55  ;;  %v297_v3 = vmul.f32 0.5, %v283_v54  ;;  %v299_v15 = vmul.f32 0.5, %v293_v55 }
 0x1f3   :  { %v300_v62 = vmul.f32 0.70710677, %v278_v58  ;;  %v302_v63 = vmul.f32 0.70710677, %v288_v59  ;;  %v296_v8 = vmul.f32 0.5, %v278_v58  ;;  %v298_v12 = vmul.f32 0.5, %v288_v59 }
 0x1f4   :  { %448 = verf.f32 %v301_v60 }
 0x1f5   :  { %450 = verf.f32 %v303_v61 }
 0x1f6   :  { %452 = verf.f32 %v300_v62 }
 0x1f7   :  { %454 = verf.f32 %v302_v63 }
 0x1fe   :  { %v449_v1 = vpop.eup %448 }
 0x1ff   :  { %v451_v2 = vpop.eup %450  ;;  %v309_v4 = vadd.f32 1.0, %v449_v1 }
 0x200   :  { %v453_v5 = vpop.eup %452  ;;  %v311_v10 = vadd.f32 1.0, %v451_v2 }
 0x201   :  { %v455_v7 = vpop.eup %454  ;;  %v308_v9 = vadd.f32 1.0, %v453_v5  ;;  %v313_v11 = vmul.f32 %v309_v4, %v297_v3 }
 0x202   :  { %v310_v14 = vadd.f32 1.0, %v455_v7  ;;  %v315_v20 = vmul.f32 %v311_v10, %v299_v15 }
 0x203   :  { %v312_v16 = vmul.f32 %v308_v9, %v296_v8  ;;  %v333_v17 = vmul.f32 %v322_v6, %v313_v11 }
 0x204   :  { %v314_v18 = vmul.f32 %v310_v14, %v298_v12  ;;  %v335_v24 = vmul.f32 %v330_v23, %v315_v20 }
 0x205   :  { %v332_v19 = vmul.f32 %v318_v0, %v312_v16 }
 0x206   :  { %v334_v21 = vmul.f32 %v326_v13, %v314_v18 }
 0x207   :  { %v336_v22 = vadd.f32 %v333_v17, %v332_v19 }
 0x209   :  { %v337_v25 = vadd.f32 %v336_v22, %v334_v21 }
 0x20b   :  { %v338_v26 = vadd.f32 %v337_v25, %v335_v24 }
 0x20d   :  { %v339_v27 = vrot.slane %v338_v26, 4 }
 0x20f   :  { %v340_v28 = vadd.f32 %v339_v27, %v338_v26 }
 0x211   :  { %v341_v29 = vrot.slane %v340_v28, 2 }
 0x213   :  { %v342_v30 = vadd.f32 %v341_v29, %v340_v28 }
 0x215   :  { %v343_v31 = vrot.slane %v342_v30, 1 }
 0x217   :  { %v344_v33 = vadd.f32 %v343_v31, %v342_v30 }
 0x219   :  { %v350_v34 = vadd.f32 %v348_v32, %v344_v33 }
 0x21b   :  { %351 = vst [vmem:[#allocation7] sm:$0x1] %v350_v34 }
 0x21c   :  { %511 = shalt.err (!%p508_p6)
}
 0x21d   :  { %s512_s12 = scalar_lea.hbm %s602_s2, 16 }
 0x21e   :  { %p513_p7 = scmp.ne.s32.totalorder %s602_s2, %s512_s12  ;;  %p516_p8 = scmp.lt.u32.totalorder %s512_s12, %s602_s2 }
 0x220   :  { %p518_p9 = pnand %p516_p8, %p513_p7 }
 0x222   :  { %521 = shalt.err (!%p518_p9)
}
 0x223   :  { %361 = dma.vmem_to_hbm [thread:$0]  %s359_s7, 16, %s602_s2, [#allocation4]  }
 0x224   :  { %526 = dma.done.wait [#allocation4], 16  }
 0x225   :  { %527 = vsyncadd [#allocation4], 4294967280 }
 0x226   :  { %365 = vsyncpa [#allocation3], 1 }
 0x227   :  { %366 = vsyncpa [#allocation6], 1 }
 0x228   :  { %367 = vsyncpa [#allocation4], 1 }

</bundles_post_ra>
